<compile_context>
chip_gen: v6e
topology: v6e:2x2x1
jax: 0.10.0
libtpu: 0.0.40
codegen_flags: <defaults>
</compile_context>

<pallas_src>
import jax
import jax.numpy as jnp
from jax.experimental import pallas as pl
from jax.experimental.pallas import tpu as pltpu

N = 8  # target numel of the collapsed view


def _copy_kernel(a_ref, o_ref):
    # Identity pass-through of the whole (tiny) tile.  The actual "view" is a
    # metadata reshape applied outside the kernel.
    o_ref[...] = a_ref[...]


def unsafe_view_collapse(a: jax.Array) -> jax.Array:
    """Pallas equivalent of `torch.ops.aten._unsafe_view(a, [8])`."""
    assert a.ndim == 2 and a.size == N, "module semantics require numel == 8"

    itemsize = jnp.dtype(a.dtype).itemsize
    out2d = pl.pallas_call(
        _copy_kernel,
        out_shape=jax.ShapeDtypeStruct(a.shape, a.dtype),
        in_specs=[pl.BlockSpec(memory_space=pltpu.MemorySpace.VMEM)],
        out_specs=pl.BlockSpec(memory_space=pltpu.MemorySpace.VMEM),
        # Zero-cost hint: lets XLA overlap/reorder neighbors around this
        # 32-byte custom call instead of treating it conservatively.
        cost_estimate=pl.CostEstimate(
            flops=0, transcendentals=0, bytes_accessed=2 * N * itemsize
        ),
    )(a)

    # The collapse itself: metadata-only reshape (bitcast under XLA).
    # TODO(synk): PyTorch _unsafe_view aliases storage; JAX is functional, so
    # this is a (correct) value-level equivalent rather than an alias.
    return jnp.reshape(out2d, (N,))


if __name__ == "__main__":
    key = jax.random.PRNGKey(0)
    # 2-D input with 8 elements, matching the ([-1, -1], float32) annotation.
    a = jax.random.normal(key, (2, 4), dtype=jnp.float32)

    result = unsafe_view_collapse(a)
    jax.block_until_ready(result)

    expected = jnp.reshape(a, (N,))
    assert result.shape == (N,)
    assert result.dtype == jnp.float32
    assert bool(jnp.all(result == expected))

    print("KERNEL_OK")
</pallas_src>

<mosaic_0001>
module attributes {stable_mosaic.version = 11 : i64} {
  func.func @_copy_kernel(%arg0: memref<2x4xf32, #tpu.memory_space<vmem>>, %arg1: memref<2x4xf32, #tpu.memory_space<vmem>>) attributes {dimension_semantics = [], scalar_prefetch = 0 : i64, scratch_operands = 0 : i64, tpu.core_type = #tpu.core_type<tc>} {
    %c0 = arith.constant 0 : index
    %c0_0 = arith.constant 0 : index
    %0 = vector.load %arg0[%c0, %c0_0] : memref<2x4xf32, #tpu.memory_space<vmem>>, vector<2x4xf32>
    %c0_1 = arith.constant 0 : index
    %c0_2 = arith.constant 0 : index
    %1 = vector.load %arg1[%c0_1, %c0_2] : memref<2x4xf32, #tpu.memory_space<vmem>>, vector<2x4xf32>
    tpu.vector_store %arg1[%c0_1, %c0_2], %0 {strides = array<i32>} : memref<2x4xf32, #tpu.memory_space<vmem>>, vector<2x4xf32>,
    return
  }
}

</mosaic_0001>

<bundles_post_ra>
// kernel: tpu_custom_call.1
= control target key start
LH: loop header
LB: loop body
LE: loop exit
PB: predicated region body
PF: predicated region fallthrough
CT: control target
= control target key end

     0   :  { %6 = vsyncpa [#allocation3], 0  ;;  %s103_s0 = inlined_call_operand.hbm [shape: f32[2,4], index: 0, kind: input, shape index: {}]   ;;  %s104_s1 = inlined_call_operand.hbm [shape: f32[2,4], index: 1, kind: output, shape index: {}]  }
   0x1   :  { %7 = vsyncpa [#allocation4], 0  ;;  %s85_s6 = smov [#allocation2]  }
   0x2   :  { %s14_s7 = sshll.u32 %s85_s6, 4  ;;  %s15_s7 = int_to_ptr.vmem [resolvable:$true] %s14_s7 }
   0x3   :  { %s49_s8 = scalar_lea.vmem %s15_s7, 32  ;;  %p54_p1 = scmp.lt.s32.totalorder %s15_s7, %s15_s7 }
   0x4   :  { %p50_p0 = scmp.ne.s32.totalorder %s15_s7, %s49_s8  ;;  %p55_p2 = scmp.lt.s32.totalorder %s49_s8, %s49_s8 }
   0x6   :  { %p56_p3 = por %p55_p2, %p54_p1 }
   0x8   :  { %p57_p4 = pnand %p56_p3, %p50_p0 }
   0xa   :  { %60 = shalt.err (!%p57_p4)
}
   0xb   :  { %17 = dma.hbm_to_vmem [thread:$0]  %s103_s0, 32, %s15_s7, [#allocation3]  }
   0xc   :  { %81 = dma.done.wait [#allocation3], 32  }
   0xd   :  { %82 = vsyncadd [#allocation3], 4294967264  ;;  %s86_s11 = smov [#allocation5]   ;;  %vm22_vm0 = vcmask 25600   ;;  %v21_v0 = vld [vmem:[#allocation2] sm:$0x3] }
   0xe   :  { %s30_s12 = sshll.u32 %s86_s11, 4  ;;  %23 = vst.msk [vmem:[#allocation5] sm:$0x3] %vm22_vm0, %v21_v0  ;;  %s31_s12 = int_to_ptr.vmem [resolvable:$true] %s30_s12 }
   0xf   :  { %s61_s13 = scalar_lea.vmem %s31_s12, 32  ;;  %p66_p6 = scmp.lt.s32.totalorder %s31_s12, %s31_s12 }
  0x10   :  { %p62_p5 = scmp.ne.s32.totalorder %s31_s12, %s61_s13  ;;  %p67_p7 = scmp.lt.s32.totalorder %s61_s13, %s61_s13 }
  0x12   :  { %p68_p8 = por %p67_p7, %p66_p6 }
  0x14   :  { %p69_p9 = pnand %p68_p8, %p62_p5 }
  0x16   :  { %72 = shalt.err (!%p69_p9)
}
  0x17   :  { %33 = dma.vmem_to_hbm [thread:$0]  %s31_s12, 32, %s104_s1, [#allocation4]  }
  0x18   :  { %83 = dma.done.wait [#allocation4], 32  }
  0x19   :  { %84 = vsyncadd [#allocation4], 4294967264 }
  0x1a   :  { %37 = vsyncpa [#allocation3], 1 }
  0x1b   :  { %38 = vsyncpa [#allocation4], 1 }

</bundles_post_ra>
